<compile_context>
chip_gen: v6e
topology: v6e:2x2x1
jax: 0.10.0
libtpu: 0.0.40
codegen_flags: <defaults>
</compile_context>

<pallas_src>
import jax
import jax.numpy as jnp
from jax.experimental import pallas as pl
from jax.experimental.pallas import tpu as pltpu

_LANE = 128          # vreg lane width
_SUBLANE = 8         # f32 sublane count
_MAX_TILE_ROWS = 1024  # (1024,128) f32 tile = 512 KiB / stream


def _complicated_input_kernel(w_ref, b_ref, x1_ref, x2_ref, x3_ref, x4_ref, o_ref):
    # w_ref: SMEM (4,) f32 | b_ref: SMEM (1,) f32 | x*/o: VMEM (tm, 128) f32
    # cat + Linear(4,1) folded exactly into 4 FMAs (avoids a degenerate K=4
    # MXU matmul); exact sigmoid — exp sits on the EUP slot, divide is free
    # because the kernel is HBM-bound.
    y = (x1_ref[...] * w_ref[0]
         + x2_ref[...] * w_ref[1]
         + x3_ref[...] * w_ref[2]
         + x4_ref[...] * w_ref[3]
         + b_ref[0])
    o_ref[...] = 1.0 / (1.0 + jnp.exp(-y))


def _fused_fallback(x1, x2, x3, x4, w, b):
    """XLA-fused elementwise path (small batches and the ragged tail)."""
    y = (x1.astype(jnp.float32) * w[0]
         + x2.astype(jnp.float32) * w[1]
         + x3.astype(jnp.float32) * w[2]
         + x4.astype(jnp.float32) * w[3]
         + b[0])
    return 1.0 / (1.0 + jnp.exp(-y))


def complicated_input_forward(x1_x2, x3_dict, x4, weight, bias,
                              *, max_tile_rows=_MAX_TILE_ROWS,
                              small_batch_threshold=1 << 14,
                              force_pallas=False,
                              core_parallel=False):
    """Forward pass matching ComplicatedInputModel.forward.

    x1_x2:   tuple (x1, x2), each [B, 1]
    x3_dict: {'x3': [B, 1]}
    x4:      [B, 1]
    weight:  [1, 4]  (nn.Linear(4, 1).weight)
    bias:    [1]     (nn.Linear(4, 1).bias)
    returns: [B, 1] float32
    """
    x1, x2 = x1_x2
    x3 = x3_dict["x3"]
    B = x1.shape[0]

    w = jnp.asarray(weight, jnp.float32).reshape(4)
    b = jnp.asarray(bias, jnp.float32).reshape(1)

    # ---- pick an aligned body: rows of 128 lanes, tm rows per grid block ----
    full_rows = B // _LANE
    tm = min(max_tile_rows, (full_rows // _SUBLANE) * _SUBLANE)
    use_pallas = (force_pallas or B >= small_batch_threshold) and tm >= _SUBLANE

    if not use_pallas:
        # 4 FMAs + 1 transcendental per element: at tiny B the pallas_call /
        # grid overhead dominates, so let XLA fuse it.
        return _fused_fallback(x1, x2, x3, x4, w, b)

    n_blocks = full_rows // tm          # every grid block is full (no OOB tail)
    rows = n_blocks * tm
    b_main = rows * _LANE

    inputs = (x1, x2, x3, x4)
    if b_main == B:
        # Aligned batch: [B,1] -> [rows,128] is a pure reshape — zero copies.
        bodies = [x.astype(jnp.float32).reshape(rows, _LANE) for x in inputs]
        tails = None
    else:
        # Ragged batch: run the kernel on the aligned prefix, route the small
        # tail (< tm*128 elements) through the XLA-fused expression.
        flats = [x.astype(jnp.float32).reshape(-1) for x in inputs]
        bodies = [f[:b_main].reshape(rows, _LANE) for f in flats]
        tails = [f[b_main:].reshape(-1, 1) for f in flats]

    smem_spec = pl.BlockSpec(memory_space=pltpu.MemorySpace.SMEM)
    tile_spec = pl.BlockSpec((tm, _LANE), lambda i: (i, 0))

    # v7x: CORE_PARALLEL actually shards the row grid across both TensorCores;
    # plain "parallel" is the safe default on single-TC v5e/v6e.
    dim_sems = (pltpu.CORE_PARALLEL,) if core_parallel else ("parallel",)

    body_out = pl.pallas_call(
        _complicated_input_kernel,
        out_shape=jax.ShapeDtypeStruct((rows, _LANE), jnp.float32),
        grid=(n_blocks,),
        in_specs=[smem_spec, smem_spec] + [tile_spec] * 4,
        out_specs=tile_spec,
        compiler_params=pltpu.CompilerParams(dimension_semantics=dim_sems),
    )(w, b, *bodies)

    body_out = body_out.reshape(b_main, 1)   # bitcast back; no trim pass
    if tails is None:
        return body_out
    tail_out = _fused_fallback(*tails, w, b)
    return jnp.concatenate([body_out, tail_out], axis=0)


if __name__ == "__main__":
    key = jax.random.PRNGKey(0)
    kw, kb, kx = jax.random.split(key, 3)

    # Deterministic Linear(4, 1) params (PyTorch-style uniform(-1/sqrt(4), 1/sqrt(4))).
    bound = 1.0 / jnp.sqrt(4.0)
    weight = jax.random.uniform(kw, (1, 4), jnp.float32, minval=-bound, maxval=bound)
    bias = jax.random.uniform(kb, (1,), jnp.float32, minval=-bound, maxval=bound)

    def reference(a1, a2, a3, a4):
        x = jnp.concatenate((a1, a2, a3, a4), axis=1)
        return jax.nn.sigmoid(x @ weight.T + bias)

    def make_inputs(seed_key, batch):
        ks = jax.random.split(seed_key, 4)
        return [jax.random.normal(k, (batch, 1), jnp.float32) for k in ks]

    # --- Test 1: Pallas path, aligned batch (zero-copy body, 2-step grid). ---
    B1 = 2048
    xs1 = make_inputs(jax.random.fold_in(kx, 1), B1)
    out1 = complicated_input_forward((xs1[0], xs1[1]), {"x3": xs1[2]}, xs1[3],
                                     weight, bias,
                                     max_tile_rows=8, force_pallas=True)
    out1 = jax.block_until_ready(out1)
    assert out1.shape == (B1, 1)
    assert jnp.allclose(out1, reference(*xs1), atol=1e-5, rtol=1e-5)

    # --- Test 2: Pallas body + XLA tail (B not a multiple of the block size). ---
    B2 = 2048 + 37
    xs2 = make_inputs(jax.random.fold_in(kx, 2), B2)
    out2 = complicated_input_forward((xs2[0], xs2[1]), {"x3": xs2[2]}, xs2[3],
                                     weight, bias,
                                     max_tile_rows=8, force_pallas=True)
    out2 = jax.block_until_ready(out2)
    assert out2.shape == (B2, 1)
    assert jnp.allclose(out2, reference(*xs2), atol=1e-5, rtol=1e-5)

    # --- Test 3: small-batch XLA-fused fallback (original test shape B=8). ---
    B3 = 8
    xs3 = make_inputs(jax.random.fold_in(kx, 3), B3)
    out3 = complicated_input_forward((xs3[0], xs3[1]), {"x3": xs3[2]}, xs3[3],
                                     weight, bias)
    out3 = jax.block_until_ready(out3)
    assert out3.shape == (B3, 1)
    assert jnp.allclose(out3, reference(*xs3), atol=1e-5, rtol=1e-5)

    print("KERNEL_OK")
</pallas_src>

<mosaic_0001>
module attributes {stable_mosaic.version = 11 : i64} {
  func.func @_complicated_input_kernel(%arg0: i32, %arg1: memref<4xf32, #tpu.memory_space<smem>>, %arg2: memref<1xf32, #tpu.memory_space<smem>>, %arg3: memref<8x128xf32, #tpu.memory_space<vmem>>, %arg4: memref<8x128xf32, #tpu.memory_space<vmem>>, %arg5: memref<8x128xf32, #tpu.memory_space<vmem>>, %arg6: memref<8x128xf32, #tpu.memory_space<vmem>>, %arg7: memref<8x128xf32, #tpu.memory_space<vmem>>) attributes {dimension_semantics = [#tpu.dimension_semantics<parallel>], iteration_bounds = array<i64: 2>, scalar_prefetch = 0 : i64, scratch_operands = 0 : i64, tpu.core_type = #tpu.core_type<tc>, window_params = [{transform_indices = @transform_0, window_bounds = array<i64: 4>}, {transform_indices = @transform_1, window_bounds = array<i64: 1>}, {transform_indices = @transform_2, window_bounds = array<i64: 8, 128>}, {transform_indices = @transform_3, window_bounds = array<i64: 8, 128>}, {transform_indices = @transform_4, window_bounds = array<i64: 8, 128>}, {transform_indices = @transform_5, window_bounds = array<i64: 8, 128>}, {transform_indices = @transform_6, window_bounds = array<i64: 8, 128>}]} {
    %c0 = arith.constant 0 : index
    %c0_0 = arith.constant 0 : index
    %0 = vector.load %arg3[%c0, %c0_0] : memref<8x128xf32, #tpu.memory_space<vmem>>, vector<8x128xf32>
    %c0_1 = arith.constant 0 : index
    %1 = memref.load %arg1[%c0_1] : memref<4xf32, #tpu.memory_space<smem>>
    %2 = vector.broadcast %1 : f32 to vector<8x128xf32>
    %3 = arith.mulf %0, %2 : vector<8x128xf32>
    %c0_2 = arith.constant 0 : index
    %c0_3 = arith.constant 0 : index
    %4 = vector.load %arg4[%c0_2, %c0_3] : memref<8x128xf32, #tpu.memory_space<vmem>>, vector<8x128xf32>
    %c1 = arith.constant 1 : index
    %5 = memref.load %arg1[%c1] : memref<4xf32, #tpu.memory_space<smem>>
    %6 = vector.broadcast %5 : f32 to vector<8x128xf32>
    %7 = arith.mulf %4, %6 : vector<8x128xf32>
    %8 = arith.addf %3, %7 : vector<8x128xf32>
    %c0_4 = arith.constant 0 : index
    %c0_5 = arith.constant 0 : index
    %9 = vector.load %arg5[%c0_4, %c0_5] : memref<8x128xf32, #tpu.memory_space<vmem>>, vector<8x128xf32>
    %c2 = arith.constant 2 : index
    %10 = memref.load %arg1[%c2] : memref<4xf32, #tpu.memory_space<smem>>
    %11 = vector.broadcast %10 : f32 to vector<8x128xf32>
    %12 = arith.mulf %9, %11 : vector<8x128xf32>
    %13 = arith.addf %8, %12 : vector<8x128xf32>
    %c0_6 = arith.constant 0 : index
    %c0_7 = arith.constant 0 : index
    %14 = vector.load %arg6[%c0_6, %c0_7] : memref<8x128xf32, #tpu.memory_space<vmem>>, vector<8x128xf32>
    %c3 = arith.constant 3 : index
    %15 = memref.load %arg1[%c3] : memref<4xf32, #tpu.memory_space<smem>>
    %16 = vector.broadcast %15 : f32 to vector<8x128xf32>
    %17 = arith.mulf %14, %16 : vector<8x128xf32>
    %18 = arith.addf %13, %17 : vector<8x128xf32>
    %c0_8 = arith.constant 0 : index
    %19 = memref.load %arg2[%c0_8] : memref<1xf32, #tpu.memory_space<smem>>
    %20 = vector.broadcast %19 : f32 to vector<8x128xf32>
    %21 = arith.addf %18, %20 : vector<8x128xf32>
    %cst = arith.constant 0.000000e+00 : f32
    %22 = vector.broadcast %cst : f32 to vector<8x128xf32>
    %23 = arith.subf %22, %21 : vector<8x128xf32>
    %24 = math.exp %23 : vector<8x128xf32>
    %cst_9 = arith.constant 1.000000e+00 : f32
    %25 = vector.broadcast %cst_9 : f32 to vector<8x128xf32>
    %26 = arith.addf %25, %24 : vector<8x128xf32>
    %cst_10 = arith.constant 1.000000e+00 : f32
    %27 = vector.broadcast %cst_10 : f32 to vector<8x128xf32>
    %28 = arith.divf %27, %26 : vector<8x128xf32>
    %c0_11 = arith.constant 0 : index
    %c0_12 = arith.constant 0 : index
    %29 = vector.load %arg7[%c0_11, %c0_12] : memref<8x128xf32, #tpu.memory_space<vmem>>, vector<8x128xf32>
    tpu.vector_store %arg7[%c0_11, %c0_12], %28 {strides = array<i32>} : memref<8x128xf32, #tpu.memory_space<vmem>>, vector<8x128xf32>,
    return
  }
  func.func @transform_0(%arg0: i32) -> i32 {
    %c0_i32 = arith.constant 0 : i32
    %c0_i32_0 = arith.constant 0 : i32
    return %c0_i32 : i32
  }
  func.func @transform_1(%arg0: i32) -> i32 {
    %c0_i32 = arith.constant 0 : i32
    %c0_i32_0 = arith.constant 0 : i32
    return %c0_i32 : i32
  }
  func.func @transform_2(%arg0: i32) -> (i32, i32) {
    %c0_i32 = arith.constant 0 : i32
    %c0_i32_0 = arith.constant 0 : i32
    return %arg0, %c0_i32 : i32, i32
  }
  func.func @transform_3(%arg0: i32) -> (i32, i32) {
    %c0_i32 = arith.constant 0 : i32
    %c0_i32_0 = arith.constant 0 : i32
    return %arg0, %c0_i32 : i32, i32
  }
  func.func @transform_4(%arg0: i32) -> (i32, i32) {
    %c0_i32 = arith.constant 0 : i32
    %c0_i32_0 = arith.constant 0 : i32
    return %arg0, %c0_i32 : i32, i32
  }
  func.func @transform_5(%arg0: i32) -> (i32, i32) {
    %c0_i32 = arith.constant 0 : i32
    %c0_i32_0 = arith.constant 0 : i32
    return %arg0, %c0_i32 : i32, i32
  }
  func.func @transform_6(%arg0: i32) -> (i32, i32) {
    %c0_i32 = arith.constant 0 : i32
    %c0_i32_0 = arith.constant 0 : i32
    return %arg0, %c0_i32 : i32, i32
  }
}

</mosaic_0001>

<bundles_post_ra>
// kernel: tpu_custom_call.1
= control target key start
LH: loop header
LB: loop body
LE: loop exit
PB: predicated region body
PF: predicated region fallthrough
CT: control target
= control target key end

     0   :  { %s1213_s0 = inlined_call_operand.vmem [shape: f32[4], index: 0, kind: input, shape index: {}]   ;;  %s1214_s1 = inlined_call_operand.<no memory space> [shape: f32[1], index: 1, kind: input, shape index: {}]   ;;  %s1215_s2 = inlined_call_operand.hbm [shape: f32[16,128], index: 2, kind: input, shape index: {}]   ;;  %s1216_s3 = inlined_call_operand.hbm [shape: f32[16,128], index: 3, kind: input, shape index: {}]   ;;  %s1217_s4 = inlined_call_operand.hbm [shape: f32[16,128], index: 4, kind: input, shape index: {}]   ;;  %s1218_s5 = inlined_call_operand.hbm [shape: f32[16,128], index: 5, kind: input, shape index: {}]   ;;  %s1219_s6 = inlined_call_operand.hbm [shape: f32[16,128], index: 6, kind: output, shape index: {}]  }
   0x1   :  { %1231 = sst [smem:[#allocation24_spill]] %s1213_s0 }
   0x2   :  { %1232 = sst [smem:[#allocation25_spill]] %s1216_s3 }
   0x3   :  { %11 = sst [smem:[#allocation2]] %s1214_s1 }
   0x4   :  { %12 = vsyncpa [#allocation6], 0 }
   0x5   :  { %13 = vsyncpa [#allocation4], 0 }
   0x6   :  { %15 = vsyncpa [#allocation4 + $0x1], 0 }
   0x7   :  { %16 = vsyncpa [#allocation9], 0 }
   0x8   :  { %18 = vsyncpa [#allocation9 + $0x1], 0 }
   0x9   :  { %19 = vsyncpa [#allocation12], 0 }
   0xa   :  { %21 = vsyncpa [#allocation12 + $0x1], 0 }
   0xb   :  { %22 = vsyncpa [#allocation5], 0 }
   0xc   :  { %24 = vsyncpa [#allocation5 + $0x1], 0  ;;  %s932_s23 = smov 0   ;;  %s934_s24 = smov 0  }
   0xd   :  { %s936_s25 = smov 0   ;;  %s938_s26 = smov 0  }
   0xe LB: > { %1233 = sst [smem:[#allocation19_spill]] %s882_s25  ;;  %s953_s1 = sadd.s32 1, %s886_s26   ;;  %s886_s26 = sphi %s938_s26, %s1258_s26   ;;  %s882_s25 = sphi %s936_s25, %s1260_s25   ;;  %s878_s24 = sphi %s934_s24, %s1262_s24   ;;  %s874_s23 = sphi %s932_s23, %s1261_s23  }
   0xf   : > { %1234 = sst [smem:[#allocation20_spill]] %s886_s26  ;;  %s79_s27 = sadd.s32 1, %s882_s25 }
  0x10   : > { %1235 = sst [smem:[#allocation21_spill]] %s953_s1  ;;  %s76_s28 = ssub.s32 %s886_s26, %s953_s1 }
  0x11   : > { %p1220_p0 = scmp.ne.s32.totalorder %s882_s25, %s878_s24  ;;  %p77_p1 = scmp.eq.s32.totalorder %s76_s28, 0 }
  0x12   : > { %p87_p2 = scmp.eq.s32.totalorder %s886_s26, 0  ;;  %p643_p4 = scmp.lt.s32.totalorder %s886_s26, 2 }
  0x13   : > { %s964_s29 = scalar_select %p77_p1, %s882_s25, %s79_s27  }
  0x14   : > { %p88_p5 = por %p87_p2, %p1220_p0  ;;  %s970_s30 = sand.u32 1, %s882_s25  }
  0x15   : > { %1236 = sst [smem:[#allocation22_spill]] %s964_s29  ;;  %s973_s7 = sshll.u32 %s970_s30, 3 }
  0x16   : > { %s976_s8 = sshll.u32 %s886_s26, 7  ;;  %p978_p6 = pnand %p643_p4, %p88_p5 }
  0x17   : > { %s252_s10 = sand.u32 1, %s886_s26   ;;  %s1238_s3 = sld [smem:[#allocation25_spill]] }
  0x18   : > { %s256_s14 = scalar_lea.vmem [#allocation8], %s973_s7  ;;  %s990_s16 = scalar_lea.sflag [#allocation9], %s252_s10 }
  0x19   : > { %s263_s15 = sshll.u32 %s256_s14, 4  ;;  %p996_p8 = pneg %p978_p6  ;;  %s264_s15 = int_to_ptr.vmem [resolvable:$true] %s263_s15 }
  0x1d   : > { %s987_s13 = scalar_lea.hbm %s1238_s3, %s976_s8  ;;  %s688_s21 = scalar_lea.hbm %s1238_s3, 256 }
  0x1e   : > { %s683_s17 = scalar_lea.hbm %s987_s13, 128  ;;  %p689_p11 = scmp.lt.s32.totalorder %s987_s13, %s1238_s3 }
  0x1f   : > { %p684_p7 = scmp.ne.s32.totalorder %s987_s13, %s683_s17  ;;  %p690_p12 = scmp.lt.s32.totalorder %s688_s21, %s683_s17 }
  0x21   : > { %p686_p9 = pnand %p996_p8, %p684_p7  ;;  %p691_p13 = por %p690_p12, %p689_p11 }
  0x23   : > { %p687_p10 = pneg %p686_p9 }
  0x25   : > { %p692_p1 = pnand %p691_p13, %p687_p10 }
  0x27   : > { %695 = shalt.err (!%p692_p1)
}
  0x28   : > { %s696_s28 = scalar_lea.vmem %s264_s15, 128  ;;  %s888_s10 = smov [#allocation8]  }
  0x29   : > { %p697_p2 = scmp.ne.s32.totalorder %s264_s15, %s696_s28  ;;  %s701_s11 = sshll.u32 %s888_s10, 4  ;;  %s702_s11 = int_to_ptr.vmem [resolvable:$false] %s701_s11 }
  0x2a   : > { %s703_s12 = scalar_lea.vmem %s702_s11, 256  ;;  %p704_p7 = scmp.lt.s32.totalorder %s264_s15, %s702_s11 }
  0x2b   : > { %p699_p4 = pnand %p697_p2, %p996_p8  ;;  %p705_p9 = scmp.lt.s32.totalorder %s703_s12, %s696_s28 }
  0x2d   : > { %p700_p5 = pneg %p699_p4  ;;  %p706_p3 = por %p705_p9, %p704_p7 }
  0x2f   : > { %p707_p0 = pnand %p706_p3, %p700_p5 }
  0x31   : > { %710 = shalt.err (!%p707_p0)
}
  0x32   : > { %631 = dma.hbm_to_vmem [thread:$0]  (!%p978_p6), %s987_s13, 128, %s264_s15, %s990_s16  }
  0x33   : > { %s1016_s14 = sadd.s32 4294967295, %s886_s26   ;;  %s581_s17 = sadd.s32 4294967294, %s886_s26  }
  0x34   : > { %p92_p0 = scmp.ne.s32.totalorder %s878_s24, %s874_s23  ;;  %p1222_p3 = scmp.eq.s32.totalorder %s1016_s14, 0 }
  0x35   : > { %p194_p10 = scmp.eq.s32.totalorder %s1016_s14, 1  ;;  %p200_p11 = scmp.eq.s32.totalorder %s581_s17, 1 }
  0x36   : > { %p1025_p12 = por %p1222_p3, %p92_p0  ;;  %p582_p13 = scmp.ge.s32.totalorder %s886_s26, 1 }
  0x37   : > { %p1241_p1 = scmp.ne.s32.totalorder %s882_s25, %s878_s24  ;;  %p1037_p4 = por %p200_p11, %p92_p0 }
  0x38   : > { %s1240_s19 = scalar_select %p1025_p12, 1, 0 }
  0x39   : > { %p1033_p2 = por %p194_p10, %p1241_p1  ;;  %p207_p5 = scmp.lt.s32.totalorder %s886_s26, 3 }
  0x3a   : > { %s1243_s15 = scalar_select %p1037_p4, 1, 0 }
  0x3b   : > { %s1242_s13 = scalar_select %p1033_p2, 1, 0 }
  0x3c   : > { %1244 = sst [smem:[#allocation23_spill]] %s1243_s15  ;;  %p1045_p7 = pnand %p582_p13, %p207_p5 }
  0x3d   : > { %s1245_s0 = sld [smem:[#allocation24_spill]]  ;;  %s1057_s11 = scalar_lea.hbm %s1215_s2, %s976_s8 }
  0x3e   : > { %s1246_s27 = scalar_select %p1045_p7, 1, 0 }
  0x3f   : > { %p621_p9 = pneg %p1045_p7  ;;  %s238_s12 = scalar_lea.vmem [#allocation7], %s973_s7 }
  0x40   : > { %s245_s17 = sshll.u32 %s238_s12, 4  ;;  %s235_s21 = scalar_lea.sflag [#allocation4], %s970_s30  ;;  %s246_s17 = int_to_ptr.vmem [resolvable:$true] %s245_s17 }
  0x41   : > { %p1062_p0 = pnand %p621_p9, %p1222_p3  ;;  %s716_s3 = scalar_lea.hbm %s1215_s2, 256 }
  0x42   : > { %p717_p1 = scmp.lt.s32.totalorder %s1057_s11, %s1215_s2 }
  0x43   : > { %s220_s22 = sshll.u32 %s1245_s0, 4  ;;  %s711_s0 = scalar_lea.hbm %s1057_s11, 128  ;;  %s1049_s22 = int_to_ptr.vmem [resolvable:$true] %s220_s22 }
  0x44   : > { %s1247_s20 = scalar_select %p1062_p0, 1, 0 }
  0x45   : > { %p712_p10 = scmp.ne.s32.totalorder %s1057_s11, %s711_s0  ;;  %p718_p5 = scmp.lt.s32.totalorder %s716_s3, %s711_s0 }
  0x47   : > { %p714_p11 = pnand %p712_p10, %p996_p8  ;;  %p719_p9 = por %p718_p5, %p717_p1 }
  0x49   : > { %p715_p13 = pneg %p714_p11 }
  0x4b   : > { %p720_p3 = pnand %p719_p9, %p715_p13 }
  0x4d   : > { %723 = shalt.err (!%p720_p3)
}
  0x4e   : > { %s724_s12 = scalar_lea.vmem %s246_s17, 128  ;;  %s889_s1 = smov [#allocation7]  }
  0x4f   : > { %p725_p4 = scmp.ne.s32.totalorder %s246_s17, %s724_s12  ;;  %s729_s26 = sshll.u32 %s889_s1, 4  ;;  %s730_s26 = int_to_ptr.vmem [resolvable:$false] %s729_s26 }
  0x50   : > { %s731_s15 = scalar_lea.vmem %s730_s26, 256  ;;  %p732_p10 = scmp.lt.s32.totalorder %s246_s17, %s730_s26 }
  0x51   : > { %p727_p2 = pnand %p725_p4, %p996_p8  ;;  %p733_p11 = scmp.lt.s32.totalorder %s731_s15, %s724_s12 }
  0x53   : > { %p728_p12 = pneg %p727_p2  ;;  %p734_p7 = por %p733_p11, %p732_p10 }
  0x55   : > { %p735_p0 = pnand %p734_p7, %p728_p12 }
  0x57   : > { %738 = shalt.err (!%p735_p0)
}
  0x58   : > { %628 = dma.hbm_to_vmem [thread:$0]  (!%p978_p6), %s1057_s11, 128, %s246_s17, %s235_s21  }
  0x59   : > { %s1087_s25 = scalar_lea.hbm %s1217_s4, %s976_s8  ;;  %s739_s1 = scalar_lea.vmem %s1049_s22, 16 }
  0x5a   : > { %p740_p3 = scmp.ne.s32.totalorder %s1049_s22, %s739_s1  ;;  %p1248_p2 = scmp.ne.s32.totalorder %s1247_s20, 0 }
  0x5b   : > { %p747_p0 = scmp.lt.s32.totalorder %s1049_s22, %s1049_s22  ;;  %p748_p13 = scmp.lt.s32.totalorder %s739_s1, %s739_s1 }
  0x5c   : > { %p741_p4 = pneg %p1248_p2 }
  0x5d   : > { %p749_p1 = por %p748_p13, %p747_p0 }
  0x5e   : > { %p742_p12 = pnand %p741_p4, %p740_p3 }
  0x60   : > { %p743_p7 = pneg %p742_p12 }
  0x62   : > { %p750_p5 = pnand %p749_p1, %p743_p7 }
  0x64   : > { %753 = shalt.err (!%p750_p5)
}
  0x65   : > { %s890_s26 = smov [#allocation3]   ;;  %s274_s29 = scalar_lea.vmem [#allocation10], %s973_s7 }
  0x66   : > { %624 = dma.vmem_to_smem (!%p1248_p2), %s1049_s22, 16, %s890_s26, [#allocation6]  }
  0x67   : > { %s281_s15 = sshll.u32 %s274_s29, 4  ;;  %s754_s11 = scalar_lea.hbm %s1087_s25, 128  ;;  %s282_s15 = int_to_ptr.vmem [resolvable:$true] %s281_s15 }
  0x68   : > { %p755_p9 = scmp.ne.s32.totalorder %s1087_s25, %s754_s11  ;;  %s759_s28 = scalar_lea.hbm %s1217_s4, 256 }
  0x69   : > { %p760_p3 = scmp.lt.s32.totalorder %s1087_s25, %s1217_s4  ;;  %p761_p4 = scmp.lt.s32.totalorder %s759_s28, %s754_s11 }
  0x6a   : > { %p757_p10 = pnand %p755_p9, %p996_p8 }
  0x6b   : > { %p762_p12 = por %p761_p4, %p760_p3 }
  0x6c   : > { %p758_p11 = pneg %p757_p10 }
  0x6e   : > { %p763_p7 = pnand %p762_p12, %p758_p11 }
  0x70   : > { %766 = shalt.err (!%p763_p7)
}
  0x71   : > { %s767_s22 = scalar_lea.vmem %s282_s15, 128  ;;  %s891_s12 = smov [#allocation10]  }
  0x72   : > { %p768_p2 = scmp.ne.s32.totalorder %s282_s15, %s767_s22  ;;  %s772_s0 = sshll.u32 %s891_s12, 4  ;;  %s773_s0 = int_to_ptr.vmem [resolvable:$false] %s772_s0 }
  0x73   : > { %s774_s3 = scalar_lea.vmem %s773_s0, 256  ;;  %p775_p1 = scmp.lt.s32.totalorder %s282_s15, %s773_s0 }
  0x74   : > { %p770_p0 = pnand %p768_p2, %p996_p8  ;;  %p776_p5 = scmp.lt.s32.totalorder %s774_s3, %s767_s22 }
  0x76   : > { %p771_p13 = pneg %p770_p0  ;;  %p777_p9 = por %p776_p5, %p775_p1 }
  0x78   : > { %p778_p10 = pnand %p777_p9, %p771_p13 }
  0x7a   : > { %781 = shalt.err (!%p778_p10)
}
  0x7b   : > { %634 = dma.hbm_to_vmem [thread:$0]  (!%p978_p6), %s1087_s25, 128, %s282_s15, %s990_s16  }
  0x7c   : > { %s1120_s29 = scalar_lea.hbm %s1218_s5, %s976_s8  ;;  %s292_s11 = scalar_lea.vmem [#allocation11], %s973_s7 }
  0x7d   : > { %s299_s17 = sshll.u32 %s292_s11, 4  ;;  %s289_s21 = scalar_lea.sflag [#allocation12], %s970_s30  ;;  %s300_s17 = int_to_ptr.vmem [resolvable:$true] %s299_s17 }
  0x7e   : > { %s782_s28 = scalar_lea.hbm %s1120_s29, 128  ;;  %s787_s16 = scalar_lea.hbm %s1218_s5, 256 }
  0x7f   : > { %p783_p11 = scmp.ne.s32.totalorder %s1120_s29, %s782_s28  ;;  %p788_p12 = scmp.lt.s32.totalorder %s1120_s29, %s1218_s5 }
  0x80   : > { %p789_p7 = scmp.lt.s32.totalorder %s787_s16, %s782_s28 }
  0x81   : > { %p785_p3 = pnand %p783_p11, %p996_p8 }
  0x82   : > { %p790_p2 = por %p789_p7, %p788_p12 }
  0x83   : > { %p786_p4 = pneg %p785_p3 }
  0x85   : > { %p791_p0 = pnand %p790_p2, %p786_p4 }
  0x87   : > { %794 = shalt.err (!%p791_p0)
}
  0x88   : > { %s795_s7 = scalar_lea.vmem %s300_s17, 128  ;;  %s892_s30 = smov [#allocation11]  }
  0x89   : > { %p796_p13 = scmp.ne.s32.totalorder %s300_s17, %s795_s7  ;;  %s800_s8 = sshll.u32 %s892_s30, 4  ;;  %s801_s8 = int_to_ptr.vmem [resolvable:$false] %s800_s8 }
  0x8a   : > { %s802_s22 = scalar_lea.vmem %s801_s8, 256  ;;  %p803_p9 = scmp.lt.s32.totalorder %s300_s17, %s801_s8 }
  0x8b   : > { %p798_p1 = pnand %p796_p13, %p996_p8  ;;  %p804_p10 = scmp.lt.s32.totalorder %s802_s22, %s795_s7 }
  0x8d   : > { %p799_p5 = pneg %p798_p1  ;;  %p805_p11 = por %p804_p10, %p803_p9 }
  0x8f   : > { %p806_p3 = pnand %p805_p11, %p799_p5 }
  0x91   : > { %809 = shalt.err (!%p806_p3)
}
  0x92   : > { %637 = dma.hbm_to_vmem [thread:$0]  (!%p978_p6), %s1120_s29, 128, %s300_s17, %s289_s21  }
  0x93   : > { %p1249_p4 = scmp.ne.s32.totalorder %s1246_s27, 0 }
  0x94   : > { %p1250_p12 = scmp.eq.s32.totalorder (!%p1249_p4), %s1016_s14, 0 }
  0x95   : > { %308 = sbr.rel (%p1249_p4) target bundleno = 232 (0xe8), region = 44 }
  0x9a   : > { %853 = dma.done.wait (%p1250_p12), [#allocation6], 16   ;;  %p1251_p8 = pmov %p1250_p12 }
  0x9b   : > { %s1147_s18 = sand.u32 1, %s878_s24   ;;  %p1252_p6 = scmp.ne.s32.totalorder %s1240_s19, 0 }
  0x9c   : > { %855 = vsyncadd (%p1251_p8), [#allocation6], 4294967280  ;;  %s1150_s12 = sshll.u32 %s1147_s18, 3  ;;  %s315_s9 = scalar_lea.sflag [#allocation4], %s1147_s18 }
  0x9d   : > { %s318_s0 = scalar_lea.vmem [#allocation7], %s1150_s12 }
  0x9e   : > { %857 = dma.done.wait (%p1252_p6), %s315_s9, 128  }
  0x9f   : > { %859 = vsyncadd (%p1252_p6), %s315_s9, 4294967168  ;;  %s323_s27 = sand.u32 1, %s1016_s14   ;;  %s327_s1 = scalar_lea.vmem [#allocation8], %s1150_s12 }
  0xa0   : > { %s324_s3 = scalar_lea.sflag [#allocation9], %s323_s27 }
  0xa1   : > { %861 = dma.done.wait (%p1252_p6), %s324_s3, 256  }
  0xa2   : > { %863 = vsyncadd (%p1252_p6), %s324_s3, 4294967040  ;;  %s336_s26 = scalar_lea.vmem [#allocation10], %s1150_s12  ;;  %s342_s29 = scalar_lea.sflag [#allocation12], %s1147_s18 }
  0xa3   : > { %s345_s11 = scalar_lea.vmem [#allocation11], %s1150_s12 }
  0xa4   : > { %865 = dma.done.wait (%p1252_p6), %s342_s29, 128  }
  0xa5   : > { %867 = vsyncadd (%p1252_p6), %s342_s29, 4294967168 }
  0xa6   : > { %350 = sfence }
  0xa7   : > { %s391_s17 = sld [smem:[#allocation3]]  ;;  %v390_v0 = vld [vmem:[%s318_s0] sm:$0xff]  ;;  %v394_v1 = vld [vmem:[%s327_s1] sm:$0xff]  ;;  %s389_s19 = scalar_lea.vmem [#allocation13], %s1150_s12 }
  0xa8   : > { %s600_s21 = sld [smem:[#allocation3 + $0x1]]  ;;  %v399_v3 = vld [vmem:[%s336_s26] sm:$0xff]  ;;  %v404_v6 = vld [vmem:[%s345_s11] sm:$0xff]  ;;  %s433_s16 = sshll.u32 %s389_s19, 4  ;;  %s1173_s16 = int_to_ptr.vmem [resolvable:$true] %s433_s16 }
  0xa9   : > { %s601_s28 = sld [smem:[#allocation3 + $0x2]]  ;;  %s604_s25 = sshll.u32 %s1016_s14, 7 }
  0xaa   : > { %s602_s20 = sld [smem:[#allocation3 + $0x3]]  ;;  %s431_s30 = scalar_lea.hbm %s1219_s6, %s604_s25 }
  0xab   : > { %s409_s10 = sld [smem:[#allocation2]]  ;;  %s420_s8 = scalar_lea.sflag [#allocation5], %s1147_s18 }
  0xac   : > { %s810_s22 = scalar_lea.vmem %s1173_s16, 128  ;;  %p1253_p2 = scmp.ne.s32.totalorder %s1242_s13, 0 }
  0xad   : > { %v392_v2 = vstv %s391_s17  ;;  %p811_p7 = scmp.ne.s32.totalorder %s1173_s16, %s810_s22  ;;  %s893_s12 = smov [#allocation13]  }
  0xae   : > { %v393_v4 = vmul.f32 %v392_v2, %v390_v0  ;;  %v396_v5 = vstv %s600_s21  ;;  %s814_s9 = sshll.u32 %s893_s12, 4  ;;  %s815_s9 = int_to_ptr.vmem [resolvable:$false] %s814_s9 }
  0xaf   : > { %v397_v7 = vmul.f32 %v396_v5, %v394_v1  ;;  %v401_v8 = vstv %s601_s28  ;;  %p812_p0 = pnand %p811_p7, %p1253_p2  ;;  %s816_s14 = scalar_lea.vmem %s815_s9, 256 }
  0xb0   : > { %v402_v9 = vmul.f32 %v401_v8, %v399_v3  ;;  %v406_v10 = vstv %s602_s20  ;;  %p817_p1 = scmp.lt.s32.totalorder %s1173_s16, %s815_s9  ;;  %p818_p5 = scmp.lt.s32.totalorder %s816_s14, %s810_s22 }
  0xb1   : > { %v398_v11 = vadd.f32 %v397_v7, %v393_v4  ;;  %v407_v12 = vmul.f32 %v406_v10, %v404_v6  ;;  %v410_v14 = vstv %s409_s10  ;;  %p813_p13 = pneg %p812_p0 }
  0xb2   : > { %p819_p9 = por %p818_p5, %p817_p1 }
  0xb3   : > { %v403_v13 = vadd.f32 %v402_v9, %v398_v11 }
  0xb4   : > { %p820_p10 = pnand %p819_p9, %p813_p13 }
  0xb5   : > { %v408_v15 = vadd.f32 %v407_v12, %v403_v13 }
  0xb7   : > { %v411_v16 = vadd.f32 %v410_v14, %v408_v15 }
  0xb9   : > { %v412_v17 = vsub.f32 0.0, %v411_v16 }
  0xbb   : > { %v413_v18 = vmul.f32 1.442695, %v412_v17 }
  0xbd   : > { %679 = vpow2.f32 %v413_v18 }
  0xca   : > { %v680_v19 = vpop.eup %679 }
  0xcb   : > { %v415_v20 = vadd.f32 1.0, %v680_v19 }
  0xcd   : > { %681 = vrcp.f32 %v415_v20 }
  0xda   : > { %v682_v21 = vpop.eup %681 }
  0xdb   : > { %418 = vst [vmem:[%s389_s19] sm:$0xff] %v682_v21 }
  0xdc   : > { %823 = shalt.err (!%p820_p10)
}
  0xdd   : > { %s824_s0 = scalar_lea.hbm %s431_s30, 128  ;;  %s828_s3 = scalar_lea.hbm %s1219_s6, 256 }
  0xde   : > { %p825_p11 = scmp.ne.s32.totalorder %s431_s30, %s824_s0  ;;  %p829_p12 = scmp.lt.s32.totalorder %s431_s30, %s1219_s6 }
  0xdf   : > { %p830_p8 = scmp.lt.s32.totalorder %s828_s3, %s824_s0 }
  0xe0   : > { %p826_p3 = pnand %p825_p11, %p1253_p2 }
  0xe1   : > { %p831_p6 = por %p830_p8, %p829_p12 }
  0xe2   : > { %p827_p4 = pneg %p826_p3 }
  0xe4   : > { %p832_p7 = pnand %p831_p6, %p827_p4 }
  0xe6   : > { %835 = shalt.err (!%p832_p7)
}
  0xe7   : > { %619 = dma.vmem_to_hbm [thread:$0]  (%p1253_p2), %s1173_s16, 128, %s431_s30, %s420_s8  }
  0xe8 PF: > { %s1254_s29 = sld [smem:[#allocation23_spill]]  ;;  %s445_s17 = sand.u32 1, %s874_s23  }
  0xe9   : > { %s1255_s11 = sld [smem:[#allocation20_spill]]  ;;  %s446_s21 = scalar_lea.sflag [#allocation5], %s445_s17 }
  0xee   : > { %p1256_p0 = scmp.ne.s32.totalorder %s1254_s29, 0 }
  0xef   : > { %p1257_p13 = scmp.ge.s32.totalorder %s1255_s11, 2 }
  0xf1   : > { %p639_p1 = pnand %p1257_p13, %p1256_p0 }
  0xf3   : > { %p640_p5 = pneg %p639_p1 }
  0xf5   : > { %869 = dma.done.wait (%p640_p5), %s446_s21, 128  }
  0xf6   : > { %871 = vsyncadd (%p640_p5), %s446_s21, 4294967168  ;;  %s1258_s26 = sld [smem:[#allocation21_spill]]  ;;  %s1261_s23 = smov %s878_s24 }
  0xf7   : > { %s1259_s28 = sld [smem:[#allocation19_spill]] }
  0xf8   : > { %s1260_s25 = sld [smem:[#allocation22_spill]] }
  0xfc   : > { %p27_p9 = scmp.ge.s32.totalorder %s1258_s26, 4  }
  0xfd   : > { %s1262_s24 = smov %s1259_s28 }
  0xfe   :  { %29 = sbr.rel (!%p27_p9) target bundleno = 14 (0xe), region = 131 }
 0x103   :  { %451 = vsyncpa [#allocation4], 1 }
 0x104   :  { %453 = vsyncpa [#allocation4 + $0x1], 1 }
 0x105   :  { %454 = vsyncpa [#allocation9], 1 }
 0x106   :  { %456 = vsyncpa [#allocation9 + $0x1], 1 }
 0x107   :  { %457 = vsyncpa [#allocation12], 1 }
 0x108   :  { %459 = vsyncpa [#allocation12 + $0x1], 1 }
 0x109   :  { %460 = vsyncpa [#allocation5], 1 }
 0x10a   :  { %462 = vsyncpa [#allocation5 + $0x1], 1 }
 0x10b   :  { %463 = vsyncpa [#allocation6], 1 }
 0x10c   :  { %465 = vsyncpa [#allocation6 + $0x1], 1 }

</bundles_post_ra>
